<compile_context>
chip_gen: v7x
topology: tpu7x:2x2x1
jax: 0.10.0
libtpu: 0.0.40
codegen_flags: <defaults>
</compile_context>

<pallas_src>
import functools

import jax
import jax.numpy as jnp
from jax import lax
from jax.experimental import pallas as pl
from jax.experimental.pallas import tpu as pltpu


# ----------------------------------------------------------------------------
# Fused Pallas kernel (one image per grid step)
# ----------------------------------------------------------------------------
def _bottleneck_kernel(x_ref, w1_ref, b1_ref, w2_ref, b2_ref, m_ref, o_ref,
                       stack_ref, *, W):
    """Refs (per grid step):
      x_ref    : (1, Cin, H*W)           f32  input image, channels on sublanes
      w1_ref   : (interC, Cin)           bf16 conv1 weight, bn1 scale folded in
      b1_ref   : (interC, 1)             f32  bn1 shift
      w2_ref   : (growth, 9*interC)      bf16 conv2 weight (tap-major columns), bn2 scale folded
      b2_ref   : (growth, 1)             f32  bn2 shift
      m_ref    : (9, H*W)                f32  per-tap border masks (1 = in bounds)
      o_ref    : (1, Cin+growth, H*W)    f32  concatenated output
      stack_ref: (9*interC, H*W)         bf16 VMEM scratch: on-chip 9-tap stack
    """
    HW = x_ref.shape[2]
    Cin = x_ref.shape[1]
    interC = w1_ref.shape[0]
    growth = w2_ref.shape[0]

    x = x_ref[0]                                              # (Cin, HW) f32

    # ---- conv1 (1x1) + bn1 (scale folded) + shift + relu : stays on-chip ----
    t = jnp.dot(w1_ref[...], x.astype(jnp.bfloat16),
                preferred_element_type=jnp.float32)           # (interC, HW) f32
    t = jnp.maximum(t + b1_ref[...], 0.0)
    # TODO(synk): training-mode dropout (p=0.35) not implemented (eval identity).

    # ---- conv2 (3x3, pad=1) + bn2 (scale folded) ----------------------------
    # Build the 9-tap stack in VMEM (lane rolls + border masks of the resident
    # activation; no HBM im2col), then contract with one MXU dot.
    for k in range(9):
        dy, dx = k // 3 - 1, k % 3 - 1
        s = dy * W + dx                                       # flat source offset
        if s == 0:
            tap = t
        else:
            # shifted[p] = t[p + s] for in-bounds p (wrapped lanes masked to 0)
            tap = pltpu.roll(t, shift=(-s) % HW, axis=1) * m_ref[k:k + 1, :]
        stack_ref[k * interC:(k + 1) * interC, :] = tap.astype(jnp.bfloat16)

    out2 = jnp.dot(w2_ref[...], stack_ref[...],
                   preferred_element_type=jnp.float32)        # (growth, HW) f32
    out2 = jnp.maximum(out2 + b2_ref[...], 0.0)

    # ---- write the concatenated, lane-dense output block --------------------
    o_ref[0, 0:Cin, :] = x.astype(o_ref.dtype)
    o_ref[0, Cin:Cin + growth, :] = out2.astype(o_ref.dtype)


# ----------------------------------------------------------------------------
# Host-side glue
# ----------------------------------------------------------------------------
def _bn_fold(gamma, beta, running_mean, running_var, eps=1e-5):
    scale = gamma / jnp.sqrt(running_var + eps)
    shift = beta - running_mean * scale
    return scale.astype(jnp.float32), shift.astype(jnp.float32)


def _tap_masks(H, W):
    """(9, H*W) f32 masks: masks[k, p] = 1 iff tap k's source pixel is in bounds."""
    hh = jnp.arange(H).reshape(H, 1)
    ww = jnp.arange(W).reshape(1, W)
    ms = []
    for k in range(9):
        dy, dx = k // 3 - 1, k % 3 - 1
        ok = (hh + dy >= 0) & (hh + dy < H) & (ww + dx >= 0) & (ww + dx < W)
        ms.append(ok.reshape(H * W))
    return jnp.stack(ms, axis=0).astype(jnp.float32)


def init_bottleneck_params(key, nChannels, growthRate):
    interChannels = 4 * growthRate
    ks = jax.random.split(key, 8)
    # conv1 weight: torch shape (interChannels, nChannels, 1, 1)
    w1 = jax.random.normal(ks[0], (interChannels, nChannels, 1, 1), jnp.float32) * 0.1
    # conv2 weight: torch shape (growthRate, interChannels, 3, 3)
    w2 = jax.random.normal(ks[1], (growthRate, interChannels, 3, 3), jnp.float32) * 0.1
    return dict(
        conv1_w=w1,
        conv2_w=w2,
        bn1_gamma=1.0 + 0.1 * jax.random.normal(ks[2], (interChannels,), jnp.float32),
        bn1_beta=0.1 * jax.random.normal(ks[3], (interChannels,), jnp.float32),
        bn1_mean=0.05 * jax.random.normal(ks[4], (interChannels,), jnp.float32),
        bn1_var=jnp.abs(jax.random.normal(ks[5], (interChannels,), jnp.float32)) + 0.5,
        bn2_gamma=1.0 + 0.1 * jax.random.normal(ks[6], (growthRate,), jnp.float32),
        bn2_beta=0.1 * jax.random.normal(ks[7], (growthRate,), jnp.float32),
        bn2_mean=jnp.zeros((growthRate,), jnp.float32),
        bn2_var=jnp.ones((growthRate,), jnp.float32),
    )


@functools.partial(jax.jit, static_argnames=("use_dropout",))
def bottleneck_forward(x_nchw, params, use_dropout=False):
    """Matches Bottleneck.forward (eval semantics). x: (N, nChannels, H, W) f32."""
    N, Cin, H, W = x_nchw.shape
    HW = H * W
    x = x_nchw.astype(jnp.float32).reshape(N, Cin, HW)        # free reshape, stays NCHW

    interC = params["conv1_w"].shape[0]
    growth = params["conv2_w"].shape[0]

    # Fold BN scales into the conv weights (tiny, constant-folded by XLA).
    s1, b1 = _bn_fold(params["bn1_gamma"], params["bn1_beta"],
                      params["bn1_mean"], params["bn1_var"])
    w1 = (params["conv1_w"].reshape(interC, Cin) * s1[:, None]).astype(jnp.bfloat16)
    b1 = b1.reshape(interC, 1)

    s2, b2 = _bn_fold(params["bn2_gamma"], params["bn2_beta"],
                      params["bn2_mean"], params["bn2_var"])
    # torch (growth, interC, 3, 3) -> (growth, ky, kx, interC) -> (growth, 9*interC)
    # Column block k = ky*3 + kx matches the kernel's tap-k rows in stack_ref.
    w2 = jnp.transpose(params["conv2_w"], (0, 2, 3, 1)).reshape(growth, 9 * interC)
    w2 = (w2 * s2[:, None]).astype(jnp.bfloat16)
    b2 = b2.reshape(growth, 1)

    masks = _tap_masks(H, W)                                  # (9, HW) f32

    kernel = functools.partial(_bottleneck_kernel, W=W)
    out = pl.pallas_call(
        kernel,
        out_shape=jax.ShapeDtypeStruct((N, Cin + growth, HW), jnp.float32),
        grid_spec=pltpu.PrefetchScalarGridSpec(
            num_scalar_prefetch=0,
            grid=(N,),
            in_specs=[
                pl.BlockSpec((1, Cin, HW), lambda n: (n, 0, 0)),           # x
                pl.BlockSpec((interC, Cin), lambda n: (0, 0)),             # w1 (bf16)
                pl.BlockSpec((interC, 1), lambda n: (0, 0)),               # b1
                pl.BlockSpec((growth, 9 * interC), lambda n: (0, 0)),      # w2 stacked (bf16)
                pl.BlockSpec((growth, 1), lambda n: (0, 0)),               # b2
                pl.BlockSpec((9, HW), lambda n: (0, 0)),                   # border masks
            ],
            out_specs=pl.BlockSpec((1, Cin + growth, HW), lambda n: (n, 0, 0)),
            scratch_shapes=[pltpu.VMEM((9 * interC, HW), jnp.bfloat16)],   # tap stack
        ),
        compiler_params=pltpu.CompilerParams(
            dimension_semantics=("parallel",)),
    )(x, w1, b1, w2, b2, masks)
    # TODO(synk): use_dropout=True uses eval-mode (identity) dropout here.
    return out.reshape(N, Cin + growth, H, W)


# ----------------------------------------------------------------------------
# Pure-XLA reference (same eval semantics) for a sanity check
# ----------------------------------------------------------------------------
def _reference_forward(x, params):
    dn = ("NCHW", "OIHW", "NCHW")
    s1, b1 = _bn_fold(params["bn1_gamma"], params["bn1_beta"],
                      params["bn1_mean"], params["bn1_var"])
    s2, b2 = _bn_fold(params["bn2_gamma"], params["bn2_beta"],
                      params["bn2_mean"], params["bn2_var"])
    o = lax.conv_general_dilated(x, params["conv1_w"], (1, 1), "VALID",
                                 dimension_numbers=dn)
    o = jnp.maximum(o * s1[None, :, None, None] + b1[None, :, None, None], 0.0)
    o = lax.conv_general_dilated(o, params["conv2_w"], (1, 1), ((1, 1), (1, 1)),
                                 dimension_numbers=dn)
    o = jnp.maximum(o * s2[None, :, None, None] + b2[None, :, None, None], 0.0)
    return jnp.concatenate([x, o], axis=1)


if __name__ == "__main__":
    key = jax.random.PRNGKey(0)
    k_x, k_p = jax.random.split(key)

    nChannels, growthRate = 4, 8          # interChannels = 32
    N, H, W = 2, 16, 16
    x = jax.random.normal(k_x, (N, nChannels, H, W), jnp.float32)
    params = init_bottleneck_params(k_p, nChannels, growthRate)

    y = bottleneck_forward(x, params, use_dropout=False)
    jax.block_until_ready(y)
    assert y.shape == (N, nChannels + growthRate, H, W), y.shape

    y_ref = jax.jit(_reference_forward)(x, params)
    jax.block_until_ready(y_ref)
    max_err = float(jnp.max(jnp.abs(y - y_ref)))
    assert jnp.allclose(y, y_ref, atol=3e-2, rtol=3e-2), max_err

    print("KERNEL_OK")
</pallas_src>

<mosaic_0001>
module attributes {stable_mosaic.version = 11 : i64} {
  func.func @_bottleneck_kernel(%arg0: i32, %arg1: memref<1x4x256xf32, #tpu.memory_space<vmem>>, %arg2: memref<32x4xbf16, #tpu.memory_space<vmem>>, %arg3: memref<32x1xf32, #tpu.memory_space<vmem>>, %arg4: memref<8x288xbf16, #tpu.memory_space<vmem>>, %arg5: memref<8x1xf32, #tpu.memory_space<vmem>>, %arg6: memref<9x256xf32, #tpu.memory_space<vmem>>, %arg7: memref<1x12x256xf32, #tpu.memory_space<vmem>>, %arg8: memref<288x256xbf16, #tpu.memory_space<vmem>>) attributes {dimension_semantics = [#tpu.dimension_semantics<parallel>], iteration_bounds = array<i64: 2>, scalar_prefetch = 0 : i64, scratch_operands = 1 : i64, tpu.core_type = #tpu.core_type<tc>, window_params = [{transform_indices = @transform_0, window_bounds = array<i64: 1, 4, 256>}, {pipeline_mode = #tpu.pipeline_mode<synchronous>, transform_indices = @transform_1, window_bounds = array<i64: 32, 4>}, {pipeline_mode = #tpu.pipeline_mode<synchronous>, transform_indices = @transform_2, window_bounds = array<i64: 32, 1>}, {pipeline_mode = #tpu.pipeline_mode<synchronous>, transform_indices = @transform_3, window_bounds = array<i64: 8, 288>}, {pipeline_mode = #tpu.pipeline_mode<synchronous>, transform_indices = @transform_4, window_bounds = array<i64: 8, 1>}, {pipeline_mode = #tpu.pipeline_mode<synchronous>, transform_indices = @transform_5, window_bounds = array<i64: 9, 256>}, {transform_indices = @transform_6, window_bounds = array<i64: 1, 12, 256>}]} {
    %c0 = arith.constant 0 : index
    %c0_0 = arith.constant 0 : index
    %c0_1 = arith.constant 0 : index
    %0 = vector.load %arg1[%c0, %c0_0, %c0_1] : memref<1x4x256xf32, #tpu.memory_space<vmem>>, vector<1x4x256xf32>
    %1 = vector.shape_cast %0 : vector<1x4x256xf32> to vector<4x256xf32>
    %c0_2 = arith.constant 0 : index
    %c0_3 = arith.constant 0 : index
    %2 = vector.load %arg2[%c0_2, %c0_3] : memref<32x4xbf16, #tpu.memory_space<vmem>>, vector<32x4xbf16>
    %3 = arith.truncf %1 : vector<4x256xf32> to vector<4x256xbf16>
    %cst = arith.constant dense<0.000000e+00> : vector<32x256xf32>
    %4 = tpu.matmul %2, %3, %cst {dimension_numbers = #tpu.dot_dimension_numbers<[1], [0], [0], [1], [0, 0, 1, 1], [], []>} : vector<32x4xbf16>, vector<4x256xbf16>, vector<32x256xf32> -> vector<32x256xf32>
    %c0_4 = arith.constant 0 : index
    %c0_5 = arith.constant 0 : index
    %5 = vector.load %arg3[%c0_4, %c0_5] : memref<32x1xf32, #tpu.memory_space<vmem>>, vector<32x1xf32>
    %6 = vector.broadcast %5 : vector<32x1xf32> to vector<32x256xf32>
    %7 = arith.addf %4, %6 : vector<32x256xf32>
    %cst_6 = arith.constant 0.000000e+00 : f32
    %8 = vector.broadcast %cst_6 : f32 to vector<32x256xf32>
    %9 = arith.maximumf %7, %8 : vector<32x256xf32>
    %c17_i32 = arith.constant 17 : i32
    %10 = tpu.dynamic_rotate %9 by %c17_i32 dim 1 : vector<32x256xf32>, i32 -> vector<32x256xf32>
    %c0_7 = arith.constant 0 : index
    %c0_8 = arith.constant 0 : index
    %11 = vector.load %arg6[%c0_7, %c0_8] : memref<9x256xf32, #tpu.memory_space<vmem>>, vector<1x256xf32>
    %12 = vector.broadcast %11 : vector<1x256xf32> to vector<32x256xf32>
    %13 = arith.mulf %10, %12 : vector<32x256xf32>
    %14 = arith.truncf %13 : vector<32x256xf32> to vector<32x256xbf16>
    %c0_9 = arith.constant 0 : index
    %c0_10 = arith.constant 0 : index
    %15 = vector.load %arg8[%c0_9, %c0_10] : memref<288x256xbf16, #tpu.memory_space<vmem>>, vector<32x256xbf16>
    tpu.vector_store %arg8[%c0_9, %c0_10], %14 {strides = array<i32>} : memref<288x256xbf16, #tpu.memory_space<vmem>>, vector<32x256xbf16>,
    %c16_i32 = arith.constant 16 : i32
    %16 = tpu.dynamic_rotate %9 by %c16_i32 dim 1 : vector<32x256xf32>, i32 -> vector<32x256xf32>
    %c1 = arith.constant 1 : index
    %c0_11 = arith.constant 0 : index
    %17 = vector.load %arg6[%c1, %c0_11] : memref<9x256xf32, #tpu.memory_space<vmem>>, vector<1x256xf32>
    %18 = vector.broadcast %17 : vector<1x256xf32> to vector<32x256xf32>
    %19 = arith.mulf %16, %18 : vector<32x256xf32>
    %20 = arith.truncf %19 : vector<32x256xf32> to vector<32x256xbf16>
    %c32 = arith.constant 32 : index
    %c0_12 = arith.constant 0 : index
    %21 = vector.load %arg8[%c32, %c0_12] : memref<288x256xbf16, #tpu.memory_space<vmem>>, vector<32x256xbf16>
    tpu.vector_store %arg8[%c32, %c0_12], %20 {strides = array<i32>} : memref<288x256xbf16, #tpu.memory_space<vmem>>, vector<32x256xbf16>,
    %c15_i32 = arith.constant 15 : i32
    %22 = tpu.dynamic_rotate %9 by %c15_i32 dim 1 : vector<32x256xf32>, i32 -> vector<32x256xf32>
    %c2 = arith.constant 2 : index
    %c0_13 = arith.constant 0 : index
    %23 = vector.load %arg6[%c2, %c0_13] : memref<9x256xf32, #tpu.memory_space<vmem>>, vector<1x256xf32>
    %24 = vector.broadcast %23 : vector<1x256xf32> to vector<32x256xf32>
    %25 = arith.mulf %22, %24 : vector<32x256xf32>
    %26 = arith.truncf %25 : vector<32x256xf32> to vector<32x256xbf16>
    %c64 = arith.constant 64 : index
    %c0_14 = arith.constant 0 : index
    %27 = vector.load %arg8[%c64, %c0_14] : memref<288x256xbf16, #tpu.memory_space<vmem>>, vector<32x256xbf16>
    tpu.vector_store %arg8[%c64, %c0_14], %26 {strides = array<i32>} : memref<288x256xbf16, #tpu.memory_space<vmem>>, vector<32x256xbf16>,
    %c1_i32 = arith.constant 1 : i32
    %28 = tpu.dynamic_rotate %9 by %c1_i32 dim 1 : vector<32x256xf32>, i32 -> vector<32x256xf32>
    %c3 = arith.constant 3 : index
    %c0_15 = arith.constant 0 : index
    %29 = vector.load %arg6[%c3, %c0_15] : memref<9x256xf32, #tpu.memory_space<vmem>>, vector<1x256xf32>
    %30 = vector.broadcast %29 : vector<1x256xf32> to vector<32x256xf32>
    %31 = arith.mulf %28, %30 : vector<32x256xf32>
    %32 = arith.truncf %31 : vector<32x256xf32> to vector<32x256xbf16>
    %c96 = arith.constant 96 : index
    %c0_16 = arith.constant 0 : index
    %33 = vector.load %arg8[%c96, %c0_16] : memref<288x256xbf16, #tpu.memory_space<vmem>>, vector<32x256xbf16>
    tpu.vector_store %arg8[%c96, %c0_16], %32 {strides = array<i32>} : memref<288x256xbf16, #tpu.memory_space<vmem>>, vector<32x256xbf16>,
    %34 = arith.truncf %9 : vector<32x256xf32> to vector<32x256xbf16>
    %c128 = arith.constant 128 : index
    %c0_17 = arith.constant 0 : index
    %35 = vector.load %arg8[%c128, %c0_17] : memref<288x256xbf16, #tpu.memory_space<vmem>>, vector<32x256xbf16>
    tpu.vector_store %arg8[%c128, %c0_17], %34 {strides = array<i32>} : memref<288x256xbf16, #tpu.memory_space<vmem>>, vector<32x256xbf16>,
    %c255_i32 = arith.constant 255 : i32
    %36 = tpu.dynamic_rotate %9 by %c255_i32 dim 1 : vector<32x256xf32>, i32 -> vector<32x256xf32>
    %c5 = arith.constant 5 : index
    %c0_18 = arith.constant 0 : index
    %37 = vector.load %arg6[%c5, %c0_18] : memref<9x256xf32, #tpu.memory_space<vmem>>, vector<1x256xf32>
    %38 = vector.broadcast %37 : vector<1x256xf32> to vector<32x256xf32>
    %39 = arith.mulf %36, %38 : vector<32x256xf32>
    %40 = arith.truncf %39 : vector<32x256xf32> to vector<32x256xbf16>
    %c160 = arith.constant 160 : index
    %c0_19 = arith.constant 0 : index
    %41 = vector.load %arg8[%c160, %c0_19] : memref<288x256xbf16, #tpu.memory_space<vmem>>, vector<32x256xbf16>
    tpu.vector_store %arg8[%c160, %c0_19], %40 {strides = array<i32>} : memref<288x256xbf16, #tpu.memory_space<vmem>>, vector<32x256xbf16>,
    %c241_i32 = arith.constant 241 : i32
    %42 = tpu.dynamic_rotate %9 by %c241_i32 dim 1 : vector<32x256xf32>, i32 -> vector<32x256xf32>
    %c6 = arith.constant 6 : index
    %c0_20 = arith.constant 0 : index
    %43 = vector.load %arg6[%c6, %c0_20] : memref<9x256xf32, #tpu.memory_space<vmem>>, vector<1x256xf32>
    %44 = vector.broadcast %43 : vector<1x256xf32> to vector<32x256xf32>
    %45 = arith.mulf %42, %44 : vector<32x256xf32>
    %46 = arith.truncf %45 : vector<32x256xf32> to vector<32x256xbf16>
    %c192 = arith.constant 192 : index
    %c0_21 = arith.constant 0 : index
    %47 = vector.load %arg8[%c192, %c0_21] : memref<288x256xbf16, #tpu.memory_space<vmem>>, vector<32x256xbf16>
    tpu.vector_store %arg8[%c192, %c0_21], %46 {strides = array<i32>} : memref<288x256xbf16, #tpu.memory_space<vmem>>, vector<32x256xbf16>,
    %c240_i32 = arith.constant 240 : i32
    %48 = tpu.dynamic_rotate %9 by %c240_i32 dim 1 : vector<32x256xf32>, i32 -> vector<32x256xf32>
    %c7 = arith.constant 7 : index
    %c0_22 = arith.constant 0 : index
    %49 = vector.load %arg6[%c7, %c0_22] : memref<9x256xf32, #tpu.memory_space<vmem>>, vector<1x256xf32>
    %50 = vector.broadcast %49 : vector<1x256xf32> to vector<32x256xf32>
    %51 = arith.mulf %48, %50 : vector<32x256xf32>
    %52 = arith.truncf %51 : vector<32x256xf32> to vector<32x256xbf16>
    %c224 = arith.constant 224 : index
    %c0_23 = arith.constant 0 : index
    %53 = vector.load %arg8[%c224, %c0_23] : memref<288x256xbf16, #tpu.memory_space<vmem>>, vector<32x256xbf16>
    tpu.vector_store %arg8[%c224, %c0_23], %52 {strides = array<i32>} : memref<288x256xbf16, #tpu.memory_space<vmem>>, vector<32x256xbf16>,
    %c239_i32 = arith.constant 239 : i32
    %54 = tpu.dynamic_rotate %9 by %c239_i32 dim 1 : vector<32x256xf32>, i32 -> vector<32x256xf32>
    %c8 = arith.constant 8 : index
    %c0_24 = arith.constant 0 : index
    %55 = vector.load %arg6[%c8, %c0_24] : memref<9x256xf32, #tpu.memory_space<vmem>>, vector<1x256xf32>
    %56 = vector.broadcast %55 : vector<1x256xf32> to vector<32x256xf32>
    %57 = arith.mulf %54, %56 : vector<32x256xf32>
    %58 = arith.truncf %57 : vector<32x256xf32> to vector<32x256xbf16>
    %c256 = arith.constant 256 : index
    %c0_25 = arith.constant 0 : index
    %59 = vector.load %arg8[%c256, %c0_25] : memref<288x256xbf16, #tpu.memory_space<vmem>>, vector<32x256xbf16>
    tpu.vector_store %arg8[%c256, %c0_25], %58 {strides = array<i32>} : memref<288x256xbf16, #tpu.memory_space<vmem>>, vector<32x256xbf16>,
    %c0_26 = arith.constant 0 : index
    %c0_27 = arith.constant 0 : index
    %60 = vector.load %arg4[%c0_26, %c0_27] : memref<8x288xbf16, #tpu.memory_space<vmem>>, vector<8x288xbf16>
    %c0_28 = arith.constant 0 : index
    %c0_29 = arith.constant 0 : index
    %61 = vector.load %arg8[%c0_28, %c0_29] : memref<288x256xbf16, #tpu.memory_space<vmem>>, vector<288x256xbf16>
    %cst_30 = arith.constant dense<0.000000e+00> : vector<8x256xf32>
    %62 = tpu.matmul %60, %61, %cst_30 {dimension_numbers = #tpu.dot_dimension_numbers<[1], [0], [0], [1], [0, 0, 1, 1], [], []>} : vector<8x288xbf16>, vector<288x256xbf16>, vector<8x256xf32> -> vector<8x256xf32>
    %c0_31 = arith.constant 0 : index
    %c0_32 = arith.constant 0 : index
    %63 = vector.load %arg5[%c0_31, %c0_32] : memref<8x1xf32, #tpu.memory_space<vmem>>, vector<8x1xf32>
    %64 = vector.broadcast %63 : vector<8x1xf32> to vector<8x256xf32>
    %65 = arith.addf %62, %64 : vector<8x256xf32>
    %cst_33 = arith.constant 0.000000e+00 : f32
    %66 = vector.broadcast %cst_33 : f32 to vector<8x256xf32>
    %67 = arith.maximumf %65, %66 : vector<8x256xf32>
    %c0_34 = arith.constant 0 : index
    %c0_35 = arith.constant 0 : index
    %c0_36 = arith.constant 0 : index
    %68 = vector.load %arg7[%c0_34, %c0_35, %c0_36] : memref<1x12x256xf32, #tpu.memory_space<vmem>>, vector<1x4x256xf32>
    %69 = vector.shape_cast %68 : vector<1x4x256xf32> to vector<4x256xf32>
    %70 = vector.shape_cast %1 : vector<4x256xf32> to vector<1x4x256xf32>
    tpu.vector_store %arg7[%c0_34, %c0_35, %c0_36], %70 {strides = array<i32>} : memref<1x12x256xf32, #tpu.memory_space<vmem>>, vector<1x4x256xf32>,
    %c0_37 = arith.constant 0 : index
    %c4 = arith.constant 4 : index
    %c0_38 = arith.constant 0 : index
    %71 = vector.load %arg7[%c0_37, %c4, %c0_38] : memref<1x12x256xf32, #tpu.memory_space<vmem>>, vector<1x8x256xf32>
    %72 = vector.shape_cast %71 : vector<1x8x256xf32> to vector<8x256xf32>
    %73 = vector.shape_cast %67 : vector<8x256xf32> to vector<1x8x256xf32>
    tpu.vector_store %arg7[%c0_37, %c4, %c0_38], %73 {strides = array<i32>} : memref<1x12x256xf32, #tpu.memory_space<vmem>>, vector<1x8x256xf32>,
    return
  }
  func.func @transform_0(%arg0: i32) -> (i32, i32, i32) {
    %c0_i32 = arith.constant 0 : i32
    %c0_i32_0 = arith.constant 0 : i32
    %c0_i32_1 = arith.constant 0 : i32
    return %arg0, %c0_i32, %c0_i32_0 : i32, i32, i32
  }
  func.func @transform_1(%arg0: i32) -> (i32, i32) {
    %c0_i32 = arith.constant 0 : i32
    %c0_i32_0 = arith.constant 0 : i32
    %c0_i32_1 = arith.constant 0 : i32
    return %c0_i32, %c0_i32_0 : i32, i32
  }
  func.func @transform_2(%arg0: i32) -> (i32, i32) {
    %c0_i32 = arith.constant 0 : i32
    %c0_i32_0 = arith.constant 0 : i32
    %c0_i32_1 = arith.constant 0 : i32
    return %c0_i32, %c0_i32_0 : i32, i32
  }
  func.func @transform_3(%arg0: i32) -> (i32, i32) {
    %c0_i32 = arith.constant 0 : i32
    %c0_i32_0 = arith.constant 0 : i32
    %c0_i32_1 = arith.constant 0 : i32
    return %c0_i32, %c0_i32_0 : i32, i32
  }
  func.func @transform_4(%arg0: i32) -> (i32, i32) {
    %c0_i32 = arith.constant 0 : i32
    %c0_i32_0 = arith.constant 0 : i32
    %c0_i32_1 = arith.constant 0 : i32
    return %c0_i32, %c0_i32_0 : i32, i32
  }
  func.func @transform_5(%arg0: i32) -> (i32, i32) {
    %c0_i32 = arith.constant 0 : i32
    %c0_i32_0 = arith.constant 0 : i32
    %c0_i32_1 = arith.constant 0 : i32
    return %c0_i32, %c0_i32_0 : i32, i32
  }
  func.func @transform_6(%arg0: i32) -> (i32, i32, i32) {
    %c0_i32 = arith.constant 0 : i32
    %c0_i32_0 = arith.constant 0 : i32
    %c0_i32_1 = arith.constant 0 : i32
    return %arg0, %c0_i32, %c0_i32_0 : i32, i32, i32
  }
}

</mosaic_0001>

<bundles_post_ra>
// kernel: bottleneck_forward.1
= control target key start
LH: loop header
LB: loop body
LE: loop exit
PB: predicated region body
PF: predicated region fallthrough
CT: control target
= control target key end

     0   :  { %s1132_s21 = smov 0   ;;  %s1737_s0 = inlined_call_operand.vmem [shape: f32[2,4,256], index: 0, kind: input, shape index: {}]   ;;  %s1738_s1 = inlined_call_operand.vmem [shape: bf16[32,4], index: 1, kind: input, shape index: {}]   ;;  %s1739_s2 = inlined_call_operand.vmem [shape: f32[32,1], index: 2, kind: input, shape index: {}]   ;;  %s1740_s3 = inlined_call_operand.vmem [shape: bf16[8,288], index: 3, kind: input, shape index: {}]   ;;  %s1741_s4 = inlined_call_operand.vmem [shape: f32[8,1], index: 4, kind: input, shape index: {}]   ;;  %s1742_s5 = inlined_call_operand.vmem [shape: f32[9,256], index: 5, kind: input, shape index: {}]   ;;  %s1743_s6 = inlined_call_operand.vmem [shape: f32[2,12,256], index: 6, kind: output, shape index: {}]  }
   0x1 LB: > { %s1022_s22 = sadd.s32 4294967295, %s1086_s21   ;;  %p1026_p0 = scmp.ge.s32.totalorder %s1086_s21, 1  ;;  %s1086_s21 = sphi %s1132_s21, %s16_s21  }
   0x2   : > { %p212_p1 = scmp.lt.s32.totalorder %s1086_s21, 3 }
   0x4   : > { %p213_p2 = pnand %p1026_p0, %p212_p1 }
   0x6   : > { %216 = sbr.rel (%p213_p2) target bundleno = 713 (0x2c9), region = 44 }
   0xd   : > { %p242_p3 = scmp.lt.s32.totalorder %s1022_s22, 1  ;;  %v1088_v0 = vmov 0   ;;  %v263_v1 = vld [vmem:[%s1739_s2] sm:$0xff]  ;;  %v265_v2 = vld [vmem:[%s1739_s2 + $0x10] sm:$0xff]  ;;  %v264_v3 = vld [vmem:[%s1739_s2 + $0x8] sm:$0xff]  ;;  %vm304_vm0 = vcmask 1041408   ;;  %v388_v50 = vlaneseq }
   0xe   : > { %343 = vmatprep.mubr.bf16.mxu0 %v1088_v0  ;;  %1072 = vset.pattern.permute.xlu0 %v1088_v0  ;;  %v266_v4 = vld [vmem:[%s1739_s2 + $0x18] sm:$0xff]  ;;  %v1075_v10 = vld [vmem:[%s1738_s1] sm:$0xff]   ;;  %vm297_vm1 = vcmask 31744   ;;  %v1076_v11 = vld [vmem:[%s1738_s1 + $0x8] sm:$0xff]   ;;  %s1089_s19 = smov 17   ;;  %s1090_s20 = smov 16  }
   0xf   : > { %s1755_s22 = smov (!%p242_p3, %s1022_s22), 1  ;;  %1073 = vset.pattern.permute.xlu1 %v1088_v0  ;;  %269 = vperm.xlu0 %1072, %v263_v1   ;;  %s1092_s23 = smov 1   ;;  %v1293_v41 = vld [vmem:[%s1740_s3] sm:$0xff]  ;;  %v402_v53 = vshrl.u32 %v388_v50, 7  ;;  %v1316_v55 = vand.u32 127, %v388_v50  ;;  %vm867_vm10 = vcmask 261120  }
  0x10   : > { %s1049_s27 = sshll.u32 %s1755_s22, 3  ;;  %s1050_s28 = sshll.u32 %s1755_s22, 5  ;;  %279 = vperm.xlu1 %1073, %v265_v2   ;;  %1745 = vst [vmem:[#allocation3_spill] sm:$0xff] %v1293_v41  ;;  %v1044_v42 = vcombine.high %v1293_v41, %v1293_v41  ;;  %v851_v48 = vld [vmem:[%s1741_s4] sm:$0xff] }
  0x11   : > { %s246_s9 = scalar_lea.vmem %s1737_s0, %s1049_s27  ;;  %s1155_s12 = scalar_lea.vmem %s1743_s6, %s1050_s28  ;;  %v1320_v57 = vsub.s32 0, %v402_v53  ;;  %v1322_v58 = vsub.s32 1, %v402_v53  ;;  %v399_v59 = vld [vmem:[%s1742_s5] ss:$8 sm:$0x3]  ;;  %vm390_vm2 = vcmp.lt.s32.totalorder %v1316_v55, 17 }
  0x12   : > { %v253_v5 = vld [vmem:[%s246_s9] sm:$0xff]  ;;  %s1091_s22 = smov 15   ;;  %s1093_s24 = smov 127   ;;  %903 = vmatprep.mubr.bf16.mxu1 %v1044_v42  ;;  %vm443_vm3 = vcmp.lt.s32.totalorder %v1316_v55, 16  ;;  %vm497_vm4 = vcmp.lt.s32.totalorder %v1316_v55, 15  ;;  %vm551_vm5 = vcmp.lt.s32.totalorder %v1316_v55, 1 }
  0x13   : > { %v259_v6 = vcombine.high %v253_v5, %v253_v5  ;;  %955 = vst [vmem:[%s1155_s12] sm:$0xf] %v253_v5  ;;  %v261_v7 = vpack.c.bf16 %v253_v5, %v253_v5  ;;  %274 = vperm.xlu0 %1072, %v264_v3   ;;  %s1094_s25 = smov 113   ;;  %s1095_s26 = smov 112   ;;  %v1331_v61 = vrot.slane %v399_v59, %v1320_v57  ;;  %v1336_v63 = vld [vmem:[%s1742_s5 + $0x1] ss:$8 sm:$0x3] }
  0x14   : > { %284 = vperm.xlu1 %1073, %v266_v4   ;;  %s1096_s27 = smov 111   ;;  %vm613_vm6 = vcmp.lt.s32.totalorder %v1316_v55, 127  ;;  %vm667_vm7 = vcmp.lt.s32.totalorder %v1316_v55, 113  ;;  %vm775_vm8 = vcmp.lt.s32.totalorder %v1316_v55, 111  ;;  %vm721_vm9 = vcmp.lt.s32.totalorder %v1316_v55, 112 }
  0x15   : > { %v262_v8 = vpack.c.bf16 %v259_v6, %v259_v6  ;;  %956 = vst [vmem:[%s1155_s12 + $0x8] sm:$0xf] %v259_v6  ;;  %v306_v9 = vsel %vm304_vm0, %v261_v7, 0  ;;  %v1352_v6 = vrot.slane %v1336_v63, %v1320_v57  ;;  %v1079_v55 = vld [vmem:[%s1740_s3 + $0x8] ss:$0 sps:$4 sm:$0xff]  }
  0x17   : > { %1033 = vmatprep.subr.msk.bf16.mxu0 %vm304_vm0, %v262_v8 }
  0x18   : > { %312 = vmatpush1.bf16.msra.mxu0 %v306_v9 }
  0x1b   : > { %1034 = vmatmul.mubr.msk.bf16.vlgmr.msra.gmra.mrb[0].mxu0 %vm297_vm1, %v1075_v10 }
  0x1c   : > { %353 = vmatprep.mubr.bf16.mxu0 %v1088_v0 }
  0x23   : > { %1035 = vmatmul.mubr.msk.bf16.gmra.mrb[4].mxu0 %vm297_vm1, %v1076_v11 }
  0x24   : > { %944 = vmatprep.mubr.bf16.mxu0 %v1088_v0  ;;  %v1339_v0 = vrot.slane %v399_v59, %v1322_v58 }
  0x8e   : > { %v270_v12 = vpop.permute.xlu0 %269 }
  0x8f   : > { %v280_v30 = vpop.permute.xlu1 %279 }
  0x92   : > { %v275_v16 = vpop.permute.xlu0 %274 }
  0x93   : > { %v285_v31 = vpop.permute.xlu1 %284 }
  0xee   : > { %v345_v13 = vpop.f32.mrb[0].mxu0 }
  0xef   : > { %v346_v14 = vadd.f32 %v345_v13, %v270_v12  ;;  %v347_v15 = vpop.f32.mrb[1].mxu0  ;;  %v1037_v13 = vld [vmem:[%s1742_s5 + $0x2] ss:$8 sm:$0x3] }
  0xf0   : > { %v349_v17 = vpop.f32.mrb[2].mxu0  ;;  %v348_v26 = vadd.f32 %v347_v15, %v270_v12 }
  0xf1   : > { %v1168_v18 = vmax.f32 %v346_v14, 0.0  ;;  %v350_v19 = vadd.f32 %v349_v17, %v275_v16  ;;  %v351_v20 = vpop.f32.mrb[3].mxu0 }
  0xf2   : > { %v352_v27 = vadd.f32 %v351_v20, %v275_v16  ;;  %v1194_v28 = vmax.f32 %v348_v26, 0.0 }
  0xf3   : > { %v1170_v21 = vmax.f32 %v350_v19, 0.0  ;;  %372 = vrot.lane.b32.xlu0 %v1168_v18, %s1089_s19 }
  0xf4   : > { %v1198_v29 = vmax.f32 %v352_v27, 0.0 }
  0xf5   : > { %374 = vrot.lane.b32.xlu1 %v1170_v21, %s1089_s19 }
  0xf6   : > { %v355_v22 = vpop.f32.mrb[4].mxu0 }
  0xf7   : > { %427 = vrot.lane.b32.xlu0 %v1168_v18, %s1090_s20  ;;  %v357_v23 = vpop.f32.mrb[5].mxu0  ;;  %v356_v32 = vadd.f32 %v355_v22, %v280_v30  ;;  %v1381_v22 = vrot.slane %v1037_v13, %v1320_v57 }
  0xf8   : > { %v359_v24 = vpop.f32.mrb[6].mxu0  ;;  %v358_v36 = vadd.f32 %v357_v23, %v280_v30  ;;  %v1384_v23 = vrot.slane %v1037_v13, %v1322_v58 }
  0xf9   : > { %429 = vrot.lane.b32.xlu1 %v1170_v21, %s1090_s20  ;;  %v361_v25 = vpop.f32.mrb[7].mxu0  ;;  %v360_v33 = vadd.f32 %v359_v24, %v285_v31  ;;  %v1218_v34 = vmax.f32 %v356_v32, 0.0 }
  0xfa   : > { %v362_v37 = vadd.f32 %v361_v25, %v285_v31  ;;  %v1242_v38 = vmax.f32 %v358_v36, 0.0  ;;  %v1038_v25 = vld [vmem:[%s1742_s5 + $0x3] ss:$8 sm:$0x3] }
  0xfb   : > { %481 = vrot.lane.b32.xlu0 %v1168_v18, %s1091_s22  ;;  %v1222_v35 = vmax.f32 %v360_v33, 0.0  ;;  %v1401_v36 = vrot.slane %v1038_v25, %v1320_v57 }
  0xfc   : > { %v1246_v39 = vmax.f32 %v362_v37, 0.0  ;;  %v1404_v37 = vrot.slane %v1038_v25, %v1322_v58 }
  0xfd   : > { %483 = vrot.lane.b32.xlu1 %v1170_v21, %s1091_s22 }
  0xff   : > { %535 = vrot.lane.b32.xlu0 %v1168_v18, %s1092_s23 }
 0x101   : > { %537 = vrot.lane.b32.xlu1 %v1170_v21, %s1092_s23 }
 0x103   : > { %597 = vrot.lane.b32.xlu0 %v1168_v18, %s1093_s24 }
 0x105   : > { %599 = vrot.lane.b32.xlu1 %v1170_v21, %s1093_s24 }
 0x107   : > { %651 = vrot.lane.b32.xlu0 %v1168_v18, %s1094_s25 }
 0x109   : > { %653 = vrot.lane.b32.xlu1 %v1170_v21, %s1094_s25 }
 0x10b   : > { %380 = vrot.lane.b32.xlu0 %v1194_v28, %s1089_s19 }
 0x10d   : > { %382 = vrot.lane.b32.xlu1 %v1198_v29, %s1089_s19 }
 0x10f   : > { %435 = vrot.lane.b32.xlu0 %v1194_v28, %s1090_s20 }
 0x111   : > { %437 = vrot.lane.b32.xlu1 %v1198_v29, %s1090_s20 }
 0x113   : > { %489 = vrot.lane.b32.xlu0 %v1194_v28, %s1091_s22 }
 0x115   : > { %491 = vrot.lane.b32.xlu1 %v1198_v29, %s1091_s22 }
 0x117   : > { %543 = vrot.lane.b32.xlu0 %v1194_v28, %s1092_s23 }
 0x119   : > { %545 = vrot.lane.b32.xlu1 %v1198_v29, %s1092_s23 }
 0x11b   : > { %605 = vrot.lane.b32.xlu0 %v1194_v28, %s1093_s24 }
 0x11d   : > { %607 = vrot.lane.b32.xlu1 %v1198_v29, %s1093_s24 }
 0x11f   : > { %376 = vrot.lane.b32.xlu0 %v1218_v34, %s1089_s19 }
 0x121   : > { %378 = vrot.lane.b32.xlu1 %v1222_v35, %s1089_s19 }
 0x123   : > { %431 = vrot.lane.b32.xlu0 %v1218_v34, %s1090_s20 }
 0x125   : > { %433 = vrot.lane.b32.xlu1 %v1222_v35, %s1090_s20 }
 0x127   : > { %485 = vrot.lane.b32.xlu0 %v1218_v34, %s1091_s22 }
 0x129   : > { %487 = vrot.lane.b32.xlu1 %v1222_v35, %s1091_s22 }
 0x12b   : > { %539 = vrot.lane.b32.xlu0 %v1218_v34, %s1092_s23 }
 0x12d   : > { %541 = vrot.lane.b32.xlu1 %v1222_v35, %s1092_s23 }
 0x12f   : > { %601 = vrot.lane.b32.xlu0 %v1218_v34, %s1093_s24 }
 0x131   : > { %603 = vrot.lane.b32.xlu1 %v1222_v35, %s1093_s24 }
 0x133   : > { %384 = vrot.lane.b32.xlu0 %v1242_v38, %s1089_s19 }
 0x135   : > { %386 = vrot.lane.b32.xlu1 %v1246_v39, %s1089_s19 }
 0x137   : > { %659 = vrot.lane.b32.xlu0 %v1194_v28, %s1094_s25 }
 0x139   : > { %661 = vrot.lane.b32.xlu1 %v1198_v29, %s1094_s25 }
 0x13b   : > { %439 = vrot.lane.b32.xlu0 %v1242_v38, %s1090_s20 }
 0x13d   : > { %441 = vrot.lane.b32.xlu1 %v1246_v39, %s1090_s20 }
 0x13f   : > { %493 = vrot.lane.b32.xlu0 %v1242_v38, %s1091_s22 }
 0x141   : > { %657 = vrot.lane.b32.xlu1 %v1222_v35, %s1094_s25 }
 0x143   : > { %547 = vrot.lane.b32.xlu0 %v1242_v38, %s1092_s23 }
 0x145   : > { %495 = vrot.lane.b32.xlu1 %v1246_v39, %s1091_s22 }
 0x147   : > { %609 = vrot.lane.b32.xlu0 %v1242_v38, %s1093_s24 }
 0x149   : > { %707 = vrot.lane.b32.xlu1 %v1170_v21, %s1095_s26 }
 0x14b   : > { %655 = vrot.lane.b32.xlu0 %v1218_v34, %s1094_s25 }
 0x14d   : > { %549 = vrot.lane.b32.xlu1 %v1246_v39, %s1092_s23 }
 0x14f   : > { %663 = vrot.lane.b32.xlu0 %v1242_v38, %s1094_s25 }
 0x151   : > { %715 = vrot.lane.b32.xlu1 %v1198_v29, %s1095_s26 }
 0x153   : > { %705 = vrot.lane.b32.xlu0 %v1168_v18, %s1095_s26 }
 0x155   : > { %761 = vrot.lane.b32.xlu1 %v1170_v21, %s1096_s27 }
 0x157   : > { %713 = vrot.lane.b32.xlu0 %v1194_v28, %s1095_s26 }
 0x159   : > { %769 = vrot.lane.b32.xlu1 %v1198_v29, %s1096_s27 }
 0x15b   : > { %759 = vrot.lane.b32.xlu0 %v1168_v18, %s1096_s27 }
 0x15d   : > { %611 = vrot.lane.b32.xlu1 %v1246_v39, %s1093_s24 }
 0x15f   : > { %767 = vrot.lane.b32.xlu0 %v1194_v28, %s1096_s27 }
 0x161   : > { %711 = vrot.lane.b32.xlu1 %v1222_v35, %s1095_s26 }
 0x163   : > { %709 = vrot.lane.b32.xlu0 %v1218_v34, %s1095_s26 }
 0x165   : > { %665 = vrot.lane.b32.xlu1 %v1246_v39, %s1094_s25  ;;  %v373_v40 = vpop.permute.xlu0 %372 }
 0x167   : > { %v375_v43 = vpop.permute.xlu1 %374  ;;  %717 = vrot.lane.b32.xlu0 %v1242_v38, %s1095_s26 }
 0x169   : > { %765 = vrot.lane.b32.xlu1 %v1222_v35, %s1096_s27  ;;  %v1299_v44 = vpop.permute.xlu0 %427 }
 0x16b   : > { %v1301_v45 = vpop.permute.xlu1 %429  ;;  %763 = vrot.lane.b32.xlu0 %v1218_v34, %s1096_s27 }
 0x16d   : > { %719 = vrot.lane.b32.xlu1 %v1246_v39, %s1095_s26  ;;  %v482_v46 = vpop.permute.xlu0 %481 }
 0x16f   : > { %v484_v47 = vpop.permute.xlu1 %483  ;;  %771 = vrot.lane.b32.xlu0 %v1242_v38, %s1096_s27 }
 0x171   : > { %773 = vrot.lane.b32.xlu1 %v1246_v39, %s1096_s27  ;;  %v536_v49 = vpop.permute.xlu0 %535 }
 0x173   : > { %v1310_v51 = vpop.permute.xlu1 %537  ;;  %854 = vperm.xlu0 %1072, %v851_v48  }
 0x175   : > { %v1312_v52 = vpop.permute.xlu0 %597 }
 0x177   : > { %v1314_v54 = vpop.permute.xlu1 %599 }
 0x179   : > { %v1318_v56 = vpop.permute.xlu0 %651 }
 0x17b   : > { %v1327_v60 = vpop.permute.xlu1 %653 }
 0x17d   : > { %v381_v62 = vpop.permute.xlu0 %380 }
 0x17e   : > { %v391_v1 = vsel %vm390_vm2, %v373_v40, %v381_v62  ;;  %v395_v2 = vsel %vm390_vm2, %v381_v62, %v373_v40 }
 0x17f   : > { %v383_v3 = vpop.permute.xlu1 %382  ;;  %v411_v7 = vmul.f32 %v1331_v61, %v395_v2  ;;  %v412_v10 = vmul.f32 %v1339_v0, %v391_v1 }
 0x180   : > { %v392_v4 = vsel %vm390_vm2, %v375_v43, %v383_v3  ;;  %v396_v5 = vsel %vm390_vm2, %v383_v3, %v375_v43 }
 0x181   : > { %v413_v8 = vmul.f32 %v1331_v61, %v396_v5  ;;  %v1356_v9 = vpop.permute.xlu0 %435  ;;  %v414_v11 = vmul.f32 %v1339_v0, %v392_v4 }
 0x182   : > { %v448_v12 = vsel %vm443_vm3, %v1356_v9, %v1299_v44 }
 0x183   : > { %v1367_v14 = vpop.permute.xlu1 %437  ;;  %v420_v15 = vpack.c.bf16 %v414_v11, %v412_v10  ;;  %v419_v16 = vpack.c.bf16 %v413_v8, %v411_v7  ;;  %v1375_v19 = vmul.f32 %v1352_v6, %v448_v12 }
 0x184   : > { %v449_v17 = vsel %vm443_vm3, %v1367_v14, %v1301_v45 }
 0x185   : > { %v1378_v20 = vmul.f32 %v1352_v6, %v449_v17  ;;  %871 = vmatprep.subr.bf16.mxu1 %v420_v15  ;;  %v490_v24 = vpop.permute.xlu0 %489 }
 0x186   : > { %v498_v26 = vsel %vm497_vm4, %v482_v46, %v490_v24  ;;  %v502_v27 = vsel %vm497_vm4, %v490_v24, %v482_v46  ;;  %872 = vmatpush1.bf16.msra.mxu1 %v419_v16 }
 0x187   : > { %v492_v30 = vpop.permute.xlu1 %491  ;;  %v1407_v40 = vmul.f32 %v1381_v22, %v502_v27  ;;  %v1410_v42 = vmul.f32 %v1384_v23, %v498_v26 }
 0x188   : > { %v499_v32 = vsel %vm497_vm4, %v484_v47, %v492_v30  ;;  %v503_v33 = vsel %vm497_vm4, %v492_v30, %v484_v47  ;;  %v1039_v47 = vld [vmem:[%s1742_s5 + $0x5] ss:$8 sm:$0x3] }
 0x189   : > { %v1413_v43 = vmul.f32 %v1381_v22, %v503_v33  ;;  %v1416_v46 = vmul.f32 %v1384_v23, %v499_v32  ;;  %v544_v48 = vpop.permute.xlu0 %543  ;;  %v1437_v4 = vrot.slane %v1039_v47, %v1320_v57  ;;  %v444_v33 = vsel %vm443_vm3, %v1299_v44, %v1356_v9 }
 0x18a   : > { %v552_v50 = vsel %vm551_vm5, %v536_v49, %v544_v48  ;;  %v556_v53 = vsel %vm551_vm5, %v544_v48, %v536_v49  ;;  %v1440_v49 = vrot.slane %v1039_v47, %v1322_v58 }
 0x18b   : > { %v546_v59 = vpop.permute.xlu1 %545  ;;  %v1443_v5 = vmul.f32 %v1401_v36, %v556_v53  ;;  %v1446_v7 = vmul.f32 %v1404_v37, %v552_v50 }
 0x18c   : > { %v553_v2 = vsel %vm551_vm5, %v1310_v51, %v546_v59  ;;  %v557_v3 = vsel %vm551_vm5, %v546_v59, %v1310_v51 }
 0x18d   : > { %v1449_v8 = vmul.f32 %v1401_v36, %v557_v3  ;;  %v1452_v10 = vmul.f32 %v1404_v37, %v553_v2  ;;  %v606_v11 = vpop.permute.xlu0 %605 }
 0x18e   : > { %v614_v51 = vsel %vm613_vm6, %v1312_v52, %v606_v11  ;;  %v618_v12 = vsel %vm613_vm6, %v606_v11, %v1312_v52 }
 0x18f   : > { %v608_v13 = vpop.permute.xlu1 %607  ;;  %v1471_v25 = vmul.f32 %v1437_v4, %v614_v51  ;;  %v1474_v52 = vmul.f32 %v1440_v49, %v618_v12  ;;  %v1040_v51 = vld [vmem:[%s1742_s5 + $0x6] ss:$8 sm:$0x3]  ;;  %v445_v12 = vsel %vm443_vm3, %v1301_v45, %v1367_v14 }
 0x190   : > { %v615_v17 = vsel %vm613_vm6, %v1314_v54, %v608_v13  ;;  %v619_v24 = vsel %vm613_vm6, %v608_v13, %v1314_v54  ;;  %v1515_v45 = vrot.slane %v1040_v51, %v1320_v57 }
 0x191   : > { %v1477_v26 = vmul.f32 %v1437_v4, %v615_v17  ;;  %v1480_v27 = vmul.f32 %v1440_v49, %v619_v24  ;;  %v377_v30 = vpop.permute.xlu0 %376  ;;  %v462_v17 = vrot.slane %v1336_v63, %v1322_v58 }
 0x193   : > { %v379_v32 = vpop.permute.xlu1 %378  ;;  %v468_v14 = vmul.f32 %v462_v17, %v445_v12  ;;  %v466_v31 = vmul.f32 %v462_v17, %v444_v33 }
 0x195   : > { %v432_v48 = vpop.permute.xlu0 %431 }
 0x197   : > { %v434_v47 = vpop.permute.xlu1 %433 }
 0x199   : > { %v486_v50 = vpop.permute.xlu0 %485 }
 0x19b   : > { %v1486_v53 = vpop.permute.xlu1 %487 }
 0x19d   : > { %v1488_v59 = vpop.permute.xlu0 %539 }
 0x19f   : > { %v1490_v2 = vpop.permute.xlu1 %541 }
 0x1a1   : > { %v1492_v3 = vpop.permute.xlu0 %601 }
 0x1a3   : > { %v1494_v11 = vpop.permute.xlu1 %603 }
 0x1a5   : > { %v385_v13 = vpop.permute.xlu0 %384 }
 0x1a6   : > { %v393_v24 = vsel %vm390_vm2, %v377_v30, %v385_v13  ;;  %v397_v54 = vsel %vm390_vm2, %v385_v13, %v377_v30  ;;  %v1522_v30 = vrot.slane %v1040_v51, %v1322_v58 }
 0x1a7   : > { %v387_v16 = vpop.permute.xlu1 %386  ;;  %v415_v13 = vmul.f32 %v1331_v61, %v397_v54  ;;  %v416_v44 = vmul.f32 %v1339_v0, %v393_v24 }
 0x1a8   : > { %v394_v63 = vsel %vm390_vm2, %v379_v32, %v387_v16  ;;  %v398_v15 = vsel %vm390_vm2, %v387_v16, %v379_v32 }
 0x1a9   : > { %v417_v9 = vmul.f32 %v1331_v61, %v398_v15  ;;  %v418_v1 = vmul.f32 %v1339_v0, %v394_v63  ;;  %v660_v62 = vpop.permute.xlu0 %659  ;;  %v474_v0 = vpack.c.bf16 %v468_v14, %v466_v31 }
 0x1aa   : > { %v668_v12 = vsel %vm667_vm7, %v1318_v56, %v660_v62  ;;  %v672_v16 = vsel %vm667_vm7, %v660_v62, %v1318_v56 }
 0x1ab   : > { %v662_v32 = vpop.permute.xlu1 %661  ;;  %v422_v51 = vpack.c.bf16 %v418_v1, %v416_v44  ;;  %v421_v41 = vpack.c.bf16 %v417_v9, %v415_v13  ;;  %v1541_v15 = vmul.f32 %v1515_v45, %v668_v12  ;;  %v1544_v33 = vmul.f32 %v1522_v30, %v672_v16 }
 0x1ac   : > { %v669_v54 = vsel %vm667_vm7, %v1327_v60, %v662_v32  ;;  %v673_v61 = vsel %vm667_vm7, %v662_v32, %v1327_v60  ;;  %v1746_v32 = vpack.c.bf16 %v1378_v20, %v1375_v19 }
 0x1ad   : > { %v1547_v56 = vmul.f32 %v1515_v45, %v669_v54  ;;  %v1550_v62 = vmul.f32 %v1522_v30, %v673_v61  ;;  %873 = vmatprep.subr.bf16.mxu1 %v422_v51  ;;  %v440_v1 = vpop.permute.xlu0 %439 }
 0x1ae   : > { %v446_v24 = vsel %vm443_vm3, %v432_v48, %v440_v1  ;;  %v450_v60 = vsel %vm443_vm3, %v440_v1, %v432_v48  ;;  %874 = vmatpush1.bf16.msra.mxu1 %v421_v41 }
 0x1af   : > { %v442_v31 = vpop.permute.xlu1 %441  ;;  %875 = vmatprep.subr.bf16.mxu1 %v474_v0  ;;  %v698_v14 = vpack.c.bf16 %v1550_v62, %v1544_v33  ;;  %v697_v63 = vpack.c.bf16 %v1547_v56, %v1541_v15  ;;  %v469_v9 = vmul.f32 %v1352_v6, %v450_v60  ;;  %v470_v12 = vmul.f32 %v462_v17, %v446_v24 }
 0x1b0   : > { %v447_v13 = vsel %vm443_vm3, %v434_v47, %v442_v31  ;;  %v451_v44 = vsel %vm443_vm3, %v442_v31, %v434_v47 }
 0x1b1   : > { %v471_v48 = vmul.f32 %v1352_v6, %v451_v44  ;;  %v472_v41 = vmul.f32 %v462_v17, %v447_v13  ;;  %v494_v16 = vpop.permute.xlu0 %493  ;;  %v1747_v17 = vpack.c.bf16 %v1416_v46, %v1410_v42  ;;  %v1748_v42 = vpack.c.bf16 %v1413_v43, %v1407_v40 }
 0x1b2   : > { %876 = vmatpush1.bf16.msra.mxu1 %v1746_v32  ;;  %v500_v47 = vsel %vm497_vm4, %v486_v50, %v494_v16  ;;  %v504_v1 = vsel %vm497_vm4, %v494_v16, %v486_v50  ;;  %v1749_v40 = vpack.c.bf16 %v1452_v10, %v1446_v7  ;;  %v1750_v7 = vpack.c.bf16 %v1449_v8, %v1443_v5  ;;  %v1042_v8 = vld [vmem:[%s1742_s5 + $0x10] ss:$8 sm:$0x3] }
 0x1b3   : > { %v1569_v51 = vpop.permute.xlu1 %657  ;;  %v476_v54 = vpack.c.bf16 %v472_v41, %v470_v12  ;;  %v475_v61 = vpack.c.bf16 %v471_v48, %v469_v9  ;;  %v523_v24 = vmul.f32 %v1381_v22, %v504_v1  ;;  %v524_v60 = vmul.f32 %v1384_v23, %v500_v47 }
 0x1b4   : > { %v592_v5 = vpack.c.bf16 %v1246_v39, %v1242_v38  ;;  %v1636_v38 = vrot.slane %v1042_v8, %v1320_v57  ;;  %v1639_v39 = vrot.slane %v1042_v8, %v1322_v58 }
 0x1b5   : > { %877 = vmatprep.subr.bf16.mxu1 %v476_v54  ;;  %v548_v0 = vpop.permute.xlu0 %547 }
 0x1b6   : > { %878 = vmatpush1.bf16.msra.mxu1 %v475_v61 }
 0x1b7   : > { %v496_v6 = vpop.permute.xlu1 %495  ;;  %879 = vmatprep.subr.bf16.mxu1 %v1747_v17 }
 0x1b8   : > { %v501_v19 = vsel %vm497_vm4, %v1486_v53, %v496_v6  ;;  %v505_v20 = vsel %vm497_vm4, %v496_v6, %v1486_v53  ;;  %v554_v53 = vsel %vm551_vm5, %v1488_v59, %v548_v0 }
 0x1b9   : > { %v525_v50 = vmul.f32 %v1381_v22, %v505_v20  ;;  %v526_v31 = vmul.f32 %v1384_v23, %v501_v19  ;;  %v610_v13 = vpop.permute.xlu0 %609  ;;  %v558_v22 = vsel %vm551_vm5, %v548_v0, %v1488_v59  ;;  %v578_v16 = vmul.f32 %v1404_v37, %v554_v53 }
 0x1ba   : > { %880 = vmatpush1.bf16.msra.mxu1 %v1748_v42  ;;  %v577_v41 = vmul.f32 %v1401_v36, %v558_v22  ;;  %v1751_v19 = vpack.c.bf16 %v1480_v27, %v1474_v52 }
 0x1bb   : > { %v1591_v46 = vpop.permute.xlu1 %707  ;;  %v530_v44 = vpack.c.bf16 %v526_v31, %v524_v60  ;;  %v529_v9 = vpack.c.bf16 %v525_v50, %v523_v24 }
 0x1bd   : > { %881 = vmatprep.subr.bf16.mxu1 %v530_v44  ;;  %v656_v12 = vpop.permute.xlu0 %655 }
 0x1be   : > { %882 = vmatpush1.bf16.msra.mxu1 %v529_v9 }
 0x1bf   : > { %v550_v23 = vpop.permute.xlu1 %549  ;;  %883 = vmatprep.subr.bf16.mxu1 %v1749_v40  ;;  %v1041_v40 = vld [vmem:[%s1742_s5 + $0x7] ss:$8 sm:$0x3] }
 0x1c0   : > { %v555_v43 = vsel %vm551_vm5, %v1490_v2, %v550_v23  ;;  %v559_v48 = vsel %vm551_vm5, %v550_v23, %v1490_v2  ;;  %v590_v2 = vpack.c.bf16 %v1198_v29, %v1194_v28  ;;  %v591_v28 = vpack.c.bf16 %v1222_v35, %v1218_v34 }
 0x1c1   : > { %v579_v59 = vmul.f32 %v1401_v36, %v559_v48  ;;  %v580_v32 = vmul.f32 %v1404_v37, %v555_v43  ;;  %v664_v54 = vpop.permute.xlu0 %663  ;;  %v589_v36 = vpack.c.bf16 %v1170_v21, %v1168_v18  ;;  %v616_v18 = vsel %vm613_vm6, %v1492_v3, %v610_v13 }
 0x1c2   : > { %884 = vmatpush1.bf16.msra.mxu1 %v1750_v7  ;;  %v620_v21 = vsel %vm613_vm6, %v610_v13, %v1492_v3  ;;  %v639_v24 = vmul.f32 %v1437_v4, %v616_v18  ;;  %v670_v23 = vsel %vm667_vm7, %v656_v12, %v664_v54  ;;  %v674_v43 = vsel %vm667_vm7, %v664_v54, %v656_v12 }
 0x1c3   : > { %v1615_v10 = vpop.permute.xlu1 %715  ;;  %v584_v61 = vpack.c.bf16 %v580_v32, %v578_v16  ;;  %v583_v0 = vpack.c.bf16 %v579_v59, %v577_v41  ;;  %v640_v60 = vmul.f32 %v1440_v49, %v620_v21  ;;  %v693_v16 = vmul.f32 %v1515_v45, %v670_v23 }
 0x1c4   : > { %v740_v59 = vrot.slane %v1041_v40, %v1322_v58  ;;  %v694_v12 = vmul.f32 %v1522_v30, %v674_v43  ;;  %v727_v54 = vsel %vm721_vm9, %v1615_v10, %v1591_v46 }
 0x1c5   : > { %885 = vmatprep.subr.bf16.mxu1 %v584_v61  ;;  %v706_v47 = vpop.permute.xlu0 %705 }
 0x1c6   : > { %886 = vmatpush1.bf16.msra.mxu1 %v583_v0 }
 0x1c7   : > { %v762_v1 = vpop.permute.xlu1 %761  ;;  %887 = vmatprep.subr.bf16.mxu1 %v590_v2  ;;  %v736_v2 = vrot.slane %v1041_v40, %v1320_v57 }
 0x1c9   : > { %v714_v37 = vpop.permute.xlu0 %713 }
 0x1ca   : > { %888 = vmatpush1.bf16.msra.mxu1 %v589_v36  ;;  %v726_v41 = vsel %vm721_vm9, %v714_v37, %v706_v47  ;;  %v722_v33 = vsel %vm721_vm9, %v706_v47, %v714_v37 }
 0x1cb   : > { %v770_v6 = vpop.permute.xlu1 %769  ;;  %889 = vmatprep.subr.bf16.mxu1 %v592_v5  ;;  %v744_v62 = vmul.f32 %v740_v59, %v726_v41  ;;  %v743_v5 = vmul.f32 %v736_v2, %v722_v33 }
 0x1cc   : > { %v777_v17 = vsel %vm775_vm8, %v762_v1, %v770_v6  ;;  %v781_v34 = vsel %vm775_vm8, %v770_v6, %v762_v1  ;;  %v746_v1 = vmul.f32 %v740_v59, %v727_v54 }
 0x1cd   : > { %v760_v29 = vpop.permute.xlu0 %759  ;;  %v799_v52 = vmul.f32 %v1636_v38, %v777_v17  ;;  %v800_v27 = vmul.f32 %v1639_v39, %v781_v34 }
 0x1ce   : > { %890 = vmatpush1.bf16.msra.mxu1 %v591_v28 }
 0x1cf   : > { %v612_v35 = vpop.permute.xlu1 %611  ;;  %891 = vmatprep.subr.bf16.mxu1 %v1751_v19 }
 0x1d0   : > { %v617_v3 = vsel %vm613_vm6, %v1494_v11, %v612_v35  ;;  %v621_v20 = vsel %vm613_vm6, %v612_v35, %v1494_v11  ;;  %v1752_v11 = vpack.c.bf16 %v1477_v26, %v1471_v25 }
 0x1d1   : > { %v641_v50 = vmul.f32 %v1437_v4, %v617_v3  ;;  %v642_v31 = vmul.f32 %v1440_v49, %v621_v20  ;;  %v768_v13 = vpop.permute.xlu0 %767 }
 0x1d2   : > { %v776_v42 = vsel %vm775_vm8, %v760_v29, %v768_v13  ;;  %v780_v44 = vsel %vm775_vm8, %v768_v13, %v760_v29  ;;  %892 = vmatpush1.bf16.msra.mxu1 %v1752_v11 }
 0x1d3   : > { %v797_v9 = vmul.f32 %v1636_v38, %v776_v42  ;;  %v798_v4 = vmul.f32 %v1639_v39, %v780_v44  ;;  %v712_v49 = vpop.permute.xlu1 %711  ;;  %v646_v53 = vpack.c.bf16 %v642_v31, %v640_v60  ;;  %v645_v22 = vpack.c.bf16 %v641_v50, %v639_v24  ;;  %v1753_v60 = vld [vmem:[#allocation3_spill] sm:$0xff] }
 0x1d4   : > { %v1043_v50 = vcombine.low %v1753_v60, %v1753_v60 }
 0x1d5   : > { %v805_v25 = vpack.c.bf16 %v799_v52, %v797_v9  ;;  %v710_v26 = vpop.permute.xlu0 %709  ;;  %893 = vmatprep.subr.bf16.mxu1 %v646_v53  ;;  %v806_v48 = vpack.c.bf16 %v800_v27, %v798_v4 }
 0x1d6   : > { %894 = vmatpush1.bf16.msra.mxu1 %v645_v22 }
 0x1d7   : > { %v666_v32 = vpop.permute.xlu1 %665  ;;  %895 = vmatprep.subr.bf16.mxu1 %v698_v14  ;;  %912 = vmatprep.subr.bf16.mxu0 %v806_v48 }
 0x1d8   : > { %v671_v7 = vsel %vm667_vm7, %v1569_v51, %v666_v32  ;;  %v675_v58 = vsel %vm667_vm7, %v666_v32, %v1569_v51  ;;  %913 = vmatpush1.bf16.msra.mxu0 %v805_v25  ;;  %v723_v51 = vsel %vm721_vm9, %v1591_v46, %v1615_v10 }
 0x1d9   : > { %v695_v14 = vmul.f32 %v1515_v45, %v671_v7  ;;  %v696_v61 = vmul.f32 %v1522_v30, %v675_v58  ;;  %v718_v0 = vpop.permute.xlu0 %717  ;;  %v752_v30 = vpack.c.bf16 %v746_v1, %v744_v62  ;;  %v745_v8 = vmul.f32 %v736_v2, %v723_v51 }
 0x1da   : > { %896 = vmatpush1.bf16.msra.mxu1 %v697_v63  ;;  %v724_v57 = vsel %vm721_vm9, %v710_v26, %v718_v0  ;;  %v728_v15 = vsel %vm721_vm9, %v718_v0, %v710_v26 }
 0x1db   : > { %v766_v36 = vpop.permute.xlu1 %765  ;;  %v700_v47 = vpack.c.bf16 %v696_v61, %v694_v12  ;;  %v699_v37 = vpack.c.bf16 %v695_v14, %v693_v16  ;;  %v751_v10 = vpack.c.bf16 %v745_v8, %v743_v5  ;;  %v747_v6 = vmul.f32 %v736_v2, %v724_v57 }
 0x1dc   : > { %v748_v28 = vmul.f32 %v740_v59, %v728_v15 }
 0x1dd   : > { %v764_v45 = vpop.permute.xlu0 %763  ;;  %897 = vmatprep.subr.bf16.mxu1 %v700_v47 }
 0x1de   : > { %898 = vmatpush1.bf16.msra.mxu1 %v699_v37 }
 0x1df   : > { %v720_v56 = vpop.permute.xlu1 %719  ;;  %899 = vmatprep.subr.bf16.mxu1 %v752_v30 }
 0x1e0   : > { %v725_v63 = vsel %vm721_vm9, %v712_v49, %v720_v56  ;;  %v729_v46 = vsel %vm721_vm9, %v720_v56, %v712_v49 }
 0x1e1   : > { %v749_v29 = vmul.f32 %v736_v2, %v725_v63  ;;  %v750_v18 = vmul.f32 %v740_v59, %v729_v46  ;;  %v772_v21 = vpop.permute.xlu0 %771 }
 0x1e2   : > { %v778_v17 = vsel %vm775_vm8, %v764_v45, %v772_v21  ;;  %v782_v34 = vsel %vm775_vm8, %v772_v21, %v764_v45  ;;  %900 = vmatpush1.bf16.msra.mxu1 %v751_v10 }
 0x1e3   : > { %v774_v35 = vpop.permute.xlu1 %773  ;;  %v754_v19 = vpack.c.bf16 %v750_v18, %v748_v28  ;;  %v753_v3 = vpack.c.bf16 %v749_v29, %v747_v6  ;;  %v801_v31 = vmul.f32 %v1636_v38, %v778_v17  ;;  %v802_v13 = vmul.f32 %v1639_v39, %v782_v34 }
 0x1e4   : > { %v779_v20 = vsel %vm775_vm8, %v766_v36, %v774_v35  ;;  %v783_v24 = vsel %vm775_vm8, %v774_v35, %v766_v36 }
 0x1e5   : > { %v803_v52 = vmul.f32 %v1636_v38, %v779_v20  ;;  %v804_v27 = vmul.f32 %v1639_v39, %v783_v24  ;;  %901 = vmatprep.subr.bf16.mxu1 %v754_v19 }
 0x1e6   : > { %902 = vmatpush1.bf16.msra.mxu1 %v753_v3 }
 0x1e7   : > { %v807_v42 = vpack.c.bf16 %v803_v52, %v801_v31  ;;  %v808_v44 = vpack.c.bf16 %v804_v27, %v802_v13 }
 0x1e9   : > { %904 = vmatmul.mubr.bf16.vlgmr.msra.gmra.mrb[0].mxu1 %v1043_v50  ;;  %914 = vmatprep.subr.bf16.mxu0 %v808_v44 }
 0x1ea   : > { %915 = vmatpush1.bf16.msra.mxu0 %v807_v42 }
 0x1ed   : > { %1046 = vmatmul.mubr.msk.bf16.vlgmr.msra.gmra.mrb[8].mxu0 %vm867_vm10, %v1079_v55 }
 0x1f2   : > { %v855_v4 = vpop.permute.xlu0 %854 }
 0x2bc   : > { %v905_v11 = vpop.f32.mrb[0].mxu1 }
 0x2bd   : > { %v907_v9 = vpop.f32.mrb[1].mxu1  ;;  %v906_v39 = vadd.f32 %v905_v11, %v855_v4 }
 0x2be   : > { %v909_v38 = vpop.f32.mrb[2].mxu1  ;;  %v908_v53 = vadd.f32 %v907_v9, %v855_v4 }
 0x2bf   : > { %v910_v49 = vpop.f32.mrb[3].mxu1 }
 0x2c0   : > { %v946_v22 = vpop.f32.mrb[8].mxu0 }
 0x2c1   : > { %v947_v23 = vadd.f32 %v946_v22, %v906_v39  ;;  %v948_v40 = vpop.f32.mrb[9].mxu0 }
 0x2c2   : > { %v949_v43 = vadd.f32 %v948_v40, %v908_v53  ;;  %v950_v25 = vpop.f32.mrb[10].mxu0 }
 0x2c3   : > { %v953_v26 = vmax.f32 %v947_v23, 0.0  ;;  %v951_v48 = vpop.f32.mrb[11].mxu0 }
 0x2c4   : > { %v954_v41 = vmax.f32 %v949_v43, 0.0 }
 0x2c5   : > { %v959_v16 = vrot.slane %v953_v26, 4 }
 0x2c6   : > { %v960_v59 = vrot.slane %v954_v41, 4 }
 0x2c7   : > { %963 = vst [vmem:[%s1155_s12 + $0x10] ss:$-12 sps:$4 sm:$0xff] %v959_v16  }
 0x2c8   : > { %964 = vst [vmem:[%s1155_s12 + $0x18] ss:$-12 sps:$4 sm:$0xff] %v960_v59  }
 0x2c9 PF: > { %s16_s21 = sadd.s32 1, %s1086_s21  }
 0x2ca   : > { %p13_p4 = scmp.ge.s32.totalorder %s16_s21, 4  }
 0x2cc   :  { %15 = sbr.rel (!%p13_p4) target bundleno = 1 (0x1), region = 81 }

</bundles_post_ra>
